<compile_context>
chip_gen: v7x
topology: tpu7x:2x2x1
jax: 0.10.0
libtpu: 0.0.40
codegen_flags: <defaults>
</compile_context>

<pallas_src>
import functools

import jax
import jax.numpy as jnp
from jax import lax
from jax.experimental import pallas as pl
from jax.experimental.pallas import tpu as pltpu

NUM_CHANNELS = 1
NUM_OUTPUTS = 10
N_PAD = 128                       # lane-dense padded output width
TM_MAX = 256                      # max rows per M tile
VMEM_BUDGET = 40 * 1024 * 1024    # conservative vs v7x's 64 MiB physical VMEM


def _round_up(x, m):
    return (x + m - 1) // m * m


def _linear_kernel(x_ref, w_ref, b_ref, o_ref, *, k_valid):
    # x_ref: [tm, K_pad] f32 (boundary blocks may contain unspecified rows/cols)
    # w_ref: [K_pad, 128] f32 (zero-padded, VMEM-resident across all M tiles)
    # b_ref: [1, 128] f32     ; o_ref: [tm, 128] f32
    x = x_ref[...]
    if k_valid is not None:
        # K is not a multiple of 128: columns >= k_valid of the boundary block
        # hold unspecified data; zero them so NaN/garbage cannot reach the dot.
        col = lax.broadcasted_iota(jnp.int32, x.shape, dimension=1)
        x = jnp.where(col < k_valid, x, 0.0)
    o_ref[...] = (
        jnp.dot(x, w_ref[...], preferred_element_type=jnp.float32) + b_ref[...]
    )


def _choose_tm(batch, k_pad):
    b8 = _round_up(batch, 8)
    # Aim for >= 2 M tiles when the batch allows it (v7x has 2 TensorCores and
    # the M axis is marked "parallel"); no-op at tiny batches.
    tm = min(TM_MAX, max(8, _round_up((b8 + 1) // 2, 8)))

    # VMEM guard: double-buffered x tile + (double-buffered) resident weight
    # + output tile must stay well under v7x's 64 MiB VMEM.
    def vmem_bytes(t):
        return 2 * t * k_pad * 4 + 2 * k_pad * N_PAD * 4 + 2 * t * N_PAD * 4

    while tm > 8 and vmem_bytes(tm) > VMEM_BUDGET:
        tm = _round_up(tm // 2, 8)
    return tm


def my_model_forward(x, w, b):
    """x: [B, 1, H, W] float32 (NCHW). w: [C*H*W, 10]. b: [10].

    Returns logits [B, 10] float32.
    """
    B = x.shape[0]
    feat = x.reshape(B, -1).astype(jnp.float32)   # row-major flatten == .view(B, -1)
    K = feat.shape[1]
    K_pad = _round_up(K, 128)
    k_valid = None if K_pad == K else K

    tm = _choose_tm(B, K_pad)
    grid_m = pl.cdiv(B, tm)

    # Weight / bias are zero-padded once to lane-dense shapes; they are tiny
    # and stay VMEM-resident (constant index_map) across all M tiles.  The
    # activation stream is passed through untouched — no pad/cast copy.
    w_p = jnp.zeros((K_pad, N_PAD), dtype=jnp.float32)
    w_p = w_p.at[:K, :NUM_OUTPUTS].set(w.astype(jnp.float32))
    b_p = jnp.zeros((1, N_PAD), dtype=jnp.float32)
    b_p = b_p.at[0, :NUM_OUTPUTS].set(b.astype(jnp.float32))

    flops = 2 * B * K * N_PAD
    bytes_accessed = feat.size * 4 + w_p.size * 4 + b_p.size * 4 + B * N_PAD * 4

    out_padded = pl.pallas_call(
        functools.partial(_linear_kernel, k_valid=k_valid),
        out_shape=jax.ShapeDtypeStruct((B, N_PAD), jnp.float32),
        grid=(grid_m,),
        in_specs=[
            pl.BlockSpec((tm, K_pad), lambda i: (i, 0)),      # activations
            pl.BlockSpec((K_pad, N_PAD), lambda i: (0, 0)),   # weight (resident)
            pl.BlockSpec((1, N_PAD), lambda i: (0, 0)),       # bias (resident)
        ],
        out_specs=pl.BlockSpec((tm, N_PAD), lambda i: (i, 0)),
        compiler_params=pltpu.CompilerParams(
            dimension_semantics=("parallel",),
            vmem_limit_bytes=48 * 1024 * 1024,
        ),
        cost_estimate=pl.CostEstimate(
            flops=flops, transcendentals=0, bytes_accessed=bytes_accessed
        ),
    )(feat, w_p, b_p)

    # Slice padded lanes back out so zero-padding never leaks.
    return out_padded[:, :NUM_OUTPUTS]


if __name__ == "__main__":
    key = jax.random.PRNGKey(0)
    kx, kw, kb = jax.random.split(key, 3)

    B, C, H, W = 2, NUM_CHANNELS, 16, 16
    x = jax.random.normal(kx, (B, C, H, W), dtype=jnp.float32)

    # Deterministic parameter init (synthetic, not a checkpoint load).
    F_dim = C * H * W
    w = jax.random.normal(kw, (F_dim, NUM_OUTPUTS), dtype=jnp.float32) * 0.02
    b = jax.random.normal(kb, (NUM_OUTPUTS,), dtype=jnp.float32) * 0.01

    logits = my_model_forward(x, w, b)
    jax.block_until_ready(logits)

    # Sanity-check against a plain-JAX f32 reference.
    ref = x.reshape(B, -1) @ w + b
    assert logits.shape == (B, NUM_OUTPUTS)
    assert jnp.allclose(logits, ref, atol=2e-2, rtol=2e-2)

    print("KERNEL_OK")
</pallas_src>

<mosaic_0001>
module attributes {stable_mosaic.version = 11 : i64} {
  func.func @_linear_kernel(%arg0: i32, %arg1: memref<8x256xf32, #tpu.memory_space<vmem>>, %arg2: memref<256x128xf32, #tpu.memory_space<vmem>>, %arg3: memref<1x128xf32, #tpu.memory_space<vmem>>, %arg4: memref<8x128xf32, #tpu.memory_space<vmem>>) attributes {dimension_semantics = [#tpu.dimension_semantics<parallel>], iteration_bounds = array<i64: 1>, scalar_prefetch = 0 : i64, scratch_operands = 0 : i64, tpu.core_type = #tpu.core_type<tc>, window_params = [{transform_indices = @transform_0, window_bounds = array<i64: 8, 256>}, {pipeline_mode = #tpu.pipeline_mode<synchronous>, transform_indices = @transform_1, window_bounds = array<i64: 256, 128>}, {pipeline_mode = #tpu.pipeline_mode<synchronous>, transform_indices = @transform_2, window_bounds = array<i64: 1, 128>}, {transform_indices = @transform_3, window_bounds = array<i64: 8, 128>}]} {
    %c0 = arith.constant 0 : index
    %c0_0 = arith.constant 0 : index
    %0 = vector.load %arg1[%c0, %c0_0] : memref<8x256xf32, #tpu.memory_space<vmem>>, vector<8x256xf32>
    %c0_1 = arith.constant 0 : index
    %c0_2 = arith.constant 0 : index
    %1 = vector.load %arg2[%c0_1, %c0_2] : memref<256x128xf32, #tpu.memory_space<vmem>>, vector<256x128xf32>
    %cst = arith.constant dense<0.000000e+00> : vector<8x128xf32>
    %2 = tpu.matmul %0, %1, %cst {dimension_numbers = #tpu.dot_dimension_numbers<[1], [0], [0], [1], [0, 0, 1, 1], [], []>} : vector<8x256xf32>, vector<256x128xf32>, vector<8x128xf32> -> vector<8x128xf32>
    %c0_3 = arith.constant 0 : index
    %c0_4 = arith.constant 0 : index
    %3 = vector.load %arg3[%c0_3, %c0_4] : memref<1x128xf32, #tpu.memory_space<vmem>>, vector<1x128xf32>
    %4 = vector.broadcast %3 : vector<1x128xf32> to vector<8x128xf32>
    %5 = arith.addf %2, %4 : vector<8x128xf32>
    %c0_5 = arith.constant 0 : index
    %c0_6 = arith.constant 0 : index
    %6 = vector.load %arg4[%c0_5, %c0_6] : memref<8x128xf32, #tpu.memory_space<vmem>>, vector<8x128xf32>
    tpu.vector_store %arg4[%c0_5, %c0_6], %5 {strides = array<i32>} : memref<8x128xf32, #tpu.memory_space<vmem>>, vector<8x128xf32>,
    return
  }
  func.func @transform_0(%arg0: i32) -> (i32, i32) {
    %c0_i32 = arith.constant 0 : i32
    %c0_i32_0 = arith.constant 0 : i32
    return %arg0, %c0_i32 : i32, i32
  }
  func.func @transform_1(%arg0: i32) -> (i32, i32) {
    %c0_i32 = arith.constant 0 : i32
    %c0_i32_0 = arith.constant 0 : i32
    %c0_i32_1 = arith.constant 0 : i32
    return %c0_i32, %c0_i32_0 : i32, i32
  }
  func.func @transform_2(%arg0: i32) -> (i32, i32) {
    %c0_i32 = arith.constant 0 : i32
    %c0_i32_0 = arith.constant 0 : i32
    %c0_i32_1 = arith.constant 0 : i32
    return %c0_i32, %c0_i32_0 : i32, i32
  }
  func.func @transform_3(%arg0: i32) -> (i32, i32) {
    %c0_i32 = arith.constant 0 : i32
    %c0_i32_0 = arith.constant 0 : i32
    return %arg0, %c0_i32 : i32, i32
  }
}

</mosaic_0001>

<bundles_post_ra>
// kernel: tpu_custom_call.1
= control target key start
LH: loop header
LB: loop body
LE: loop exit
PB: predicated region body
PF: predicated region fallthrough
CT: control target
= control target key end

     0   :  { %8 = vsyncpa [#allocation3], 0  ;;  %s421_s0 = inlined_call_operand.hbm [shape: f32[2,256], index: 0, kind: input, shape index: {}]   ;;  %s422_s1 = inlined_call_operand.hbm [shape: f32[256,128], index: 1, kind: input, shape index: {}]   ;;  %s423_s2 = inlined_call_operand.vmem [shape: f32[1,128], index: 2, kind: input, shape index: {}]   ;;  %s424_s3 = inlined_call_operand.hbm [shape: f32[2,128], index: 3, kind: output, shape index: {}]  }
   0x1   :  { %9 = vsyncpa [#allocation6], 0 }
   0x2   :  { %10 = vsyncpa [#allocation4], 0 }
   0x3   :  { %15 = vsyncadd [#allocation3], 192  ;;  %s353_s12 = smov [#allocation2]   ;;  %s281_s16 = scalar_lea.hbm %s421_s0, 64 }
   0x4   :  { %s16_s13 = sshll.u32 %s353_s12, 4  ;;  %p282_p0 = scmp.ne.s32.totalorder %s421_s0, %s281_s16  ;;  %s17_s13 = int_to_ptr.vmem [resolvable:$true] %s16_s13 }
   0x5   :  { %p285_p1 = scmp.lt.u32.totalorder %s281_s16, %s421_s0 }
   0x7   :  { %p287_p2 = pnand %p285_p1, %p282_p0 }
   0x9   :  { %290 = shalt.err (!%p287_p2)
}
   0xa   :  { %s291_s21 = scalar_lea.vmem %s17_s13, 64  ;;  %s295_s22 = scalar_lea.vmem %s17_s13, 256 }
   0xb   :  { %p292_p3 = scmp.ne.s32.totalorder %s17_s13, %s291_s21  ;;  %p296_p4 = scmp.lt.s32.totalorder %s17_s13, %s17_s13 }
   0xc   :  { %p297_p5 = scmp.lt.s32.totalorder %s295_s22, %s291_s21 }
   0xe   :  { %p298_p6 = por %p297_p5, %p296_p4 }
  0x10   :  { %p299_p7 = pnand %p298_p6, %p292_p3 }
  0x12   :  { %302 = shalt.err (!%p299_p7)
}
  0x13   :  { %s354_s23 = smov 64   ;;  %s355_s24 = smov 4  }
  0x14   :  { %22 = dma.hbm_to_vmem [thread:$0]  %s421_s0, 64, %s17_s13, [#allocation3], %s354_s23, %s354_s23, %s355_s24  }
  0x15   :  { %s356_s27 = smov [#allocation5]   ;;  %s303_s4 = scalar_lea.hbm %s422_s1, 4096 }
  0x16   :  { %s28_s28 = sshll.u32 %s356_s27, 4  ;;  %p304_p8 = scmp.ne.s32.totalorder %s422_s1, %s303_s4  ;;  %s29_s28 = int_to_ptr.vmem [resolvable:$true] %s28_s28 }
  0x17   :  { %p307_p9 = scmp.lt.u32.totalorder %s303_s4, %s422_s1 }
  0x19   :  { %p309_p10 = pnand %p307_p9, %p304_p8 }
  0x1b   :  { %312 = shalt.err (!%p309_p10)
}
  0x1c   :  { %s313_s9 = scalar_lea.vmem %s29_s28, 4096  ;;  %p318_p12 = scmp.lt.s32.totalorder %s29_s28, %s29_s28 }
  0x1d   :  { %p314_p11 = scmp.ne.s32.totalorder %s29_s28, %s313_s9  ;;  %p319_p13 = scmp.lt.s32.totalorder %s313_s9, %s313_s9 }
  0x1f   :  { %p320_p0 = por %p319_p13, %p318_p12 }
  0x21   :  { %p321_p1 = pnand %p320_p0, %p314_p11 }
  0x23   :  { %324 = shalt.err (!%p321_p1)
}
  0x24   :  { %s357_s0 = smov 128   ;;  %s358_s10 = smov 8  }
  0x25   :  { %34 = dma.hbm_to_vmem [thread:$0]  %s422_s1, 4096, %s29_s28, [#allocation6], %s357_s0, %s357_s0, %s358_s10  }
  0x26   :  { %347 = dma.done.wait [#allocation3], 256  }
  0x27   :  { %348 = vsyncadd [#allocation3], 4294967040 }
  0x28   :  { %349 = dma.done.wait [#allocation6], 4096  }
  0x29   :  { %350 = vsyncadd [#allocation6], 4294963200  ;;  %v63_v0 = vld [vmem:[#allocation5 + $0x80] sm:$0xff]  ;;  %v64_v1 = vld [vmem:[#allocation5 + $0x88] sm:$0xff] }
  0x2a   :  { %v47_v2 = vld [vmem:[#allocation5] sm:$0xff]  ;;  %v235_v3 = vpack.c.bf16 %v64_v1, %v63_v0  ;;  %v48_v4 = vld [vmem:[#allocation5 + $0x8] sm:$0xff]  ;;  %v65_v5 = vld [vmem:[#allocation5 + $0x90] sm:$0xff] }
  0x2b   :  { %v66_v6 = vld [vmem:[#allocation5 + $0x98] sm:$0xff]  ;;  %v237_v7 = vpack.c.bf16 %v48_v4, %v47_v2  ;;  %v49_v9 = vld [vmem:[#allocation5 + $0x10] sm:$0xff]  ;;  %v67_v11 = vld [vmem:[#allocation5 + $0xa0] sm:$0xff] }
  0x2c   :  { %v239_v8 = vpack.c.bf16 %v66_v6, %v65_v5  ;;  %v50_v10 = vld [vmem:[#allocation5 + $0x18] sm:$0xff]  ;;  %236 = vmatprep.subr.bf16.mxu0 %v235_v3  ;;  %v68_v12 = vld [vmem:[#allocation5 + $0xa8] sm:$0xff]  ;;  %v51_v15 = vld [vmem:[#allocation5 + $0x20] sm:$0xff] }
  0x2d   :  { %238 = vmatpush3.bf16.msra.mxu0 %v237_v7  ;;  %v241_v13 = vpack.c.bf16 %v50_v10, %v49_v9  ;;  %v243_v14 = vpack.c.bf16 %v68_v12, %v67_v11  ;;  %v52_v16 = vld [vmem:[#allocation5 + $0x28] sm:$0xff]  ;;  %v69_v17 = vld [vmem:[#allocation5 + $0xb0] sm:$0xff]  ;;  %v70_v18 = vld [vmem:[#allocation5 + $0xb8] sm:$0xff] }
  0x2e   :  { %240 = vmatprep.subr.bf16.mxu0 %v239_v8  ;;  %v245_v19 = vpack.c.bf16 %v52_v16, %v51_v15  ;;  %v247_v20 = vpack.c.bf16 %v70_v18, %v69_v17  ;;  %v53_v21 = vld [vmem:[#allocation5 + $0x30] sm:$0xff]  ;;  %v54_v22 = vld [vmem:[#allocation5 + $0x38] sm:$0xff]  ;;  %v71_v23 = vld [vmem:[#allocation5 + $0xc0] sm:$0xff] }
  0x2f   :  { %v72_v24 = vld [vmem:[#allocation5 + $0xc8] sm:$0xff]  ;;  %v249_v25 = vpack.c.bf16 %v54_v22, %v53_v21  ;;  %v279_v26 = vld.sshfl [vmem:[#allocation2] sm:$0xff pattern:$0x76325410]  ;;  %v55_v29 = vld [vmem:[#allocation5 + $0x40] sm:$0xff] }
  0x30   :  { %v280_v27 = vld.sshfl [vmem:[#allocation2 + $0x8] sm:$0xff pattern:$0x76325410]  ;;  %v251_v28 = vpack.c.bf16 %v72_v24, %v71_v23  ;;  %v56_v30 = vld [vmem:[#allocation5 + $0x48] sm:$0xff]  ;;  %v73_v31 = vld [vmem:[#allocation5 + $0xd0] sm:$0xff] }
  0x31   :  { %242 = vmatpush3.bf16.msra.mxu0 %v241_v13  ;;  %v74_v32 = vld [vmem:[#allocation5 + $0xd8] sm:$0xff]  ;;  %v253_v33 = vpack.c.bf16 %v56_v30, %v55_v29  ;;  %v107_v34 = vcombine.high %v279_v26, %v280_v27  ;;  %v57_v36 = vld [vmem:[#allocation5 + $0x50] sm:$0xff]  ;;  %v75_v38 = vld [vmem:[#allocation5 + $0xe0] sm:$0xff]  ;;  %v106_v51 = vcombine.low %v279_v26, %v280_v27 }
  0x32   :  { %244 = vmatprep.subr.bf16.mxu0 %v243_v14  ;;  %v255_v35 = vpack.c.bf16 %v74_v32, %v73_v31  ;;  %v58_v37 = vld [vmem:[#allocation5 + $0x58] sm:$0xff]  ;;  %v76_v39 = vld [vmem:[#allocation5 + $0xe8] sm:$0xff]  ;;  %v59_v42 = vld [vmem:[#allocation5 + $0x60] sm:$0xff] }
  0x33   :  { %174 = vmatprep.mubr.f32.mxu0 %v107_v34  ;;  %v257_v40 = vpack.c.bf16 %v58_v37, %v57_v36  ;;  %v259_v41 = vpack.c.bf16 %v76_v39, %v75_v38  ;;  %v60_v43 = vld [vmem:[#allocation5 + $0x68] sm:$0xff]  ;;  %v77_v44 = vld [vmem:[#allocation5 + $0xf0] sm:$0xff]  ;;  %v78_v45 = vld [vmem:[#allocation5 + $0xf8] sm:$0xff] }
  0x34   :  { %v261_v46 = vpack.c.bf16 %v60_v43, %v59_v42  ;;  %v263_v47 = vpack.c.bf16 %v78_v45, %v77_v44  ;;  %v61_v48 = vld [vmem:[#allocation5 + $0x70] sm:$0xff]  ;;  %v62_v49 = vld [vmem:[#allocation5 + $0x78] sm:$0xff] }
  0x35   :  { %246 = vmatpush3.bf16.msra.mxu0 %v245_v19  ;;  %v265_v50 = vpack.c.bf16 %v62_v49, %v61_v48  ;;  %v199_v53 = vld [vmem:[%s423_s2] ss:$0 sm:$0xff] }
  0x36   :  { %248 = vmatprep.subr.bf16.mxu0 %v247_v20 }
  0x39   :  { %250 = vmatpush3.bf16.msra.mxu0 %v249_v25 }
  0x3a   :  { %252 = vmatprep.subr.bf16.mxu0 %v251_v28 }
  0x3d   :  { %254 = vmatpush3.bf16.msra.mxu0 %v253_v33 }
  0x3e   :  { %256 = vmatprep.subr.bf16.mxu0 %v255_v35 }
  0x41   :  { %258 = vmatpush3.bf16.msra.mxu0 %v257_v40 }
  0x42   :  { %260 = vmatprep.subr.bf16.mxu0 %v259_v41 }
  0x45   :  { %262 = vmatpush3.bf16.msra.mxu0 %v261_v46 }
  0x46   :  { %264 = vmatprep.subr.bf16.mxu0 %v263_v47 }
  0x49   :  { %266 = vmatpush3.bf16.msra.mxu0 %v265_v50 }
  0x4c   :  { %175 = vmatmul.mubr.f32.vlgmr.msra.gmra.mrb[0].mxu0 %v106_v51 }
 0x11f   :  { %v232_v52 = vpop.f32.mrb[0].mxu0 }
 0x120   :  { %v233_v54 = vpop.f32.mrb[1].mxu0 }
 0x121   :  { %v234_v55 = vadd.f32 %v233_v54, %v232_v52 }
 0x123   :  { %v177_v56 = vadd.f32 %v234_v55, %v199_v53 }
 0x125   :  { %180 = vst [vmem:[#allocation7] sm:$0xff] %v177_v56 }
 0x126   :  { %185 = vsyncadd [#allocation4], 96  ;;  %s359_s14 = smov [#allocation7]  }
 0x127   :  { %s186_s15 = sshll.u32 %s359_s14, 4  ;;  %s187_s15 = int_to_ptr.vmem [resolvable:$true] %s186_s15 }
 0x128   :  { %s325_s16 = scalar_lea.vmem %s187_s15, 32  ;;  %s329_s17 = scalar_lea.vmem %s187_s15, 128 }
 0x129   :  { %p326_p2 = scmp.ne.s32.totalorder %s187_s15, %s325_s16  ;;  %p330_p3 = scmp.lt.s32.totalorder %s187_s15, %s187_s15 }
 0x12a   :  { %p331_p4 = scmp.lt.s32.totalorder %s329_s17, %s325_s16 }
 0x12c   :  { %p332_p5 = por %p331_p4, %p330_p3 }
 0x12e   :  { %p333_p6 = pnand %p332_p5, %p326_p2 }
 0x130   :  { %336 = shalt.err (!%p333_p6)
}
 0x131   :  { %s337_s2 = scalar_lea.hbm %s424_s3, 32 }
 0x132   :  { %p338_p7 = scmp.ne.s32.totalorder %s424_s3, %s337_s2  ;;  %p341_p8 = scmp.lt.u32.totalorder %s337_s2, %s424_s3 }
 0x134   :  { %p343_p9 = pnand %p341_p8, %p338_p7 }
 0x136   :  { %346 = shalt.err (!%p343_p9)
}
 0x137   :  { %s360_s24 = smov 32   ;;  %s361_s25 = smov 2  }
 0x138   :  { %192 = dma.vmem_to_hbm [thread:$0]  %s187_s15, 32, %s424_s3, [#allocation4], %s360_s24, %s360_s24, %s361_s25  }
 0x139   :  { %351 = dma.done.wait [#allocation4], 128  }
 0x13a   :  { %352 = vsyncadd [#allocation4], 4294967168 }
 0x13b   :  { %196 = vsyncpa [#allocation3], 1 }
 0x13c   :  { %197 = vsyncpa [#allocation6], 1 }
 0x13d   :  { %198 = vsyncpa [#allocation4], 1 }

</bundles_post_ra>
